<compile_context>
chip_gen: v6e
topology: v6e:2x2x1
jax: 0.10.0
libtpu: 0.0.40
codegen_flags: <defaults>
</compile_context>

<pallas_src>
import jax
import jax.numpy as jnp
from jax.experimental import pallas as pl
from jax.experimental.pallas import tpu as pltpu


def _round_up(x, m):
    return ((x + m - 1) // m) * m


# ----------------------------------------------------------------------------
# Kernels
# ----------------------------------------------------------------------------
def _ffn_resident_kernel(x_ref, w1_ref, b1_ref, w2_ref, b2_ref, o_ref):
    # x_ref: (TM, D) f32; w1_ref: (D, H) bf16; b1_ref: (1, H) f32;
    # w2_ref: (H, D) bf16; b2_ref: (1, D) f32; o_ref: (TM, D) f32.
    x = x_ref[...].astype(jnp.bfloat16)                       # bf16 MXU operand
    h = jnp.dot(x, w1_ref[...], preferred_element_type=jnp.float32)
    h = jnp.maximum(h + b1_ref[...], 0.0)                     # bias + ReLU in f32 (VPU)
    y = jnp.dot(h.astype(jnp.bfloat16), w2_ref[...],
                preferred_element_type=jnp.float32) + b2_ref[...]
    o_ref[...] = y.astype(o_ref.dtype)


def _ffn_stream_kernel(x_ref, w1_ref, b1_ref, w2_ref, b2_ref, o_ref, acc_ref):
    # Hidden dim streamed: w1_ref (D, TH), b1_ref (1, TH), w2_ref (TH, D).
    hi = pl.program_id(1)

    @pl.when(hi == 0)
    def _():
        acc_ref[...] = jnp.zeros_like(acc_ref)

    x = x_ref[...].astype(jnp.bfloat16)
    h = jnp.dot(x, w1_ref[...], preferred_element_type=jnp.float32)
    h = jnp.maximum(h + b1_ref[...], 0.0)                     # ReLU is per-hidden-channel
    acc_ref[...] += jnp.dot(h.astype(jnp.bfloat16), w2_ref[...],
                            preferred_element_type=jnp.float32)

    @pl.when(hi == pl.num_programs(1) - 1)
    def _():
        o_ref[...] = (acc_ref[...] + b2_ref[...]).astype(o_ref.dtype)


# ----------------------------------------------------------------------------
# Sizing helpers
# ----------------------------------------------------------------------------
def _vmem_cap_bytes():
    """Per-generation usable VMEM budget (90% of physical capacity)."""
    try:
        cap = int(pltpu.get_tpu_info().vmem_capacity_bytes)
    except Exception:
        cap = 64 * 1024 * 1024        # conservative fallback (v7x per-core VMEM)
    return int(0.9 * cap)


def _choose_tm(M, tm_max):
    """Token tile: large (amortize per-step overhead), multiple of 8 (sublane),
    but keep >= 2 grid steps when M allows so v7x's two TCs both get work."""
    TM = min(_round_up(tm_max, 8), _round_up(M, 8))
    while TM >= 512 and (M + TM - 1) // TM < 2:
        TM //= 2
    return TM


def _resident_vmem_est(TM, D, H, weight_bufs=1):
    return (4 * TM * D * 4                                   # x + out tiles (2 bufs each, f32)
            + weight_bufs * (2 * D * H * 2 + (H + D) * 4)    # bf16 W1+W2 + f32 biases
            + TM * H * 6                                     # h intermediate: f32 + bf16
            + TM * D * 2)                                    # x bf16 copy


def _stream_vmem_est(TM, D, TH):
    return (4 * TM * D * 4                 # x + out tiles (2 bufs each, f32)
            + 4 * D * TH * 2               # W1 (D,TH) + W2 (TH,D) chunks, 2 bufs, bf16
            + 2 * TH * 4 + D * 4           # b1 chunks (2 bufs) + b2
            + TM * D * 4                   # f32 accumulator scratch
            + TM * TH * 6                  # h chunk: f32 + bf16
            + TM * D * 2)                  # x bf16 copy


def _choose_th(H, D, TM, cap):
    """Largest hidden chunk (multiple of 128, dividing H) whose footprint fits the budget."""
    cands = [c for c in (2048, 1024, 512, 256, 128) if H % c == 0]
    if not cands:
        return H
    for c in cands:
        if _stream_vmem_est(TM, D, c) * 5 // 4 + (16 << 20) <= cap:
            return c
    return cands[-1]


# ----------------------------------------------------------------------------
# Wrapper
# ----------------------------------------------------------------------------
def feed_forward(x, w1, b1, w2, b2, *, tm=512, th=None, force_stream=False):
    """x: (B, T, D) f32. w1: (D, 4D), b1: (4D,), w2: (4D, D), b2: (D,). Returns (B, T, D) f32."""
    B, T, D = x.shape
    H = w1.shape[1]
    M = B * T

    x2d = x.reshape(M, D)
    TM = _choose_tm(M, tm)
    M_pad = _round_up(M, TM)
    if M_pad != M:
        # Zero-padded tail rows produce relu(b1)@W2+b2 garbage inside the kernel;
        # they are sliced off below and never aliased into a persistent buffer.
        x2d = jnp.pad(x2d, ((0, M_pad - M), (0, 0)))
    grid_m = M_pad // TM

    w1_bf16 = w1.astype(jnp.bfloat16)
    w2_bf16 = w2.astype(jnp.bfloat16)
    b1_2d = b1.reshape(1, H).astype(jnp.float32)
    b2_2d = b2.reshape(1, D).astype(jnp.float32)

    cap = _vmem_cap_bytes()

    cost = pl.CostEstimate(
        flops=4 * M_pad * D * H,                              # two matmuls
        transcendentals=0,
        bytes_accessed=2 * M_pad * D * 4 + 2 * D * H * 2 + (H + D) * 4,
    )

    def run_resident(weight_bufs):
        est = _resident_vmem_est(TM, D, H, weight_bufs)
        kw = dict(pipeline_mode=pl.Buffered(1)) if weight_bufs == 1 else {}
        return pl.pallas_call(
            _ffn_resident_kernel,
            out_shape=jax.ShapeDtypeStruct((M_pad, D), x.dtype),
            grid_spec=pltpu.PrefetchScalarGridSpec(
                num_scalar_prefetch=0,
                grid=(grid_m,),
                in_specs=[
                    pl.BlockSpec((TM, D), lambda i: (i, 0)),          # streamed token tiles
                    pl.BlockSpec((D, H), lambda i: (0, 0), **kw),     # resident, single-buffered
                    pl.BlockSpec((1, H), lambda i: (0, 0), **kw),
                    pl.BlockSpec((H, D), lambda i: (0, 0), **kw),
                    pl.BlockSpec((1, D), lambda i: (0, 0), **kw),
                ],
                out_specs=pl.BlockSpec((TM, D), lambda i: (i, 0)),
            ),
            compiler_params=pltpu.CompilerParams(
                dimension_semantics=("parallel",),
                vmem_limit_bytes=min(cap, est + est // 4 + (16 << 20)),
            ),
            cost_estimate=cost,
        )(x2d, w1_bf16, b1_2d, w2_bf16, b2_2d)

    def run_stream(TH, weight_bufs):
        grid_h = H // TH
        est = _stream_vmem_est(TM, D, TH)
        kw = dict(pipeline_mode=pl.Buffered(1)) if weight_bufs == 1 else {}
        return pl.pallas_call(
            _ffn_stream_kernel,
            out_shape=jax.ShapeDtypeStruct((M_pad, D), x.dtype),
            grid_spec=pltpu.PrefetchScalarGridSpec(
                num_scalar_prefetch=0,
                grid=(grid_m, grid_h),                               # H-reduction axis last
                in_specs=[
                    pl.BlockSpec((TM, D), lambda i, h: (i, 0)),      # constant over h: no re-DMA
                    pl.BlockSpec((D, TH), lambda i, h: (0, h)),      # streamed W1 columns
                    pl.BlockSpec((1, TH), lambda i, h: (0, h)),
                    pl.BlockSpec((TH, D), lambda i, h: (h, 0)),      # streamed W2 rows
                    pl.BlockSpec((1, D), lambda i, h: (0, 0), **kw),
                ],
                out_specs=pl.BlockSpec((TM, D), lambda i, h: (i, 0)),
                scratch_shapes=[pltpu.VMEM((TM, D), jnp.float32)],   # f32 accumulator
            ),
            compiler_params=pltpu.CompilerParams(
                dimension_semantics=("parallel", "arbitrary"),
                vmem_limit_bytes=min(cap, est + est // 4 + (16 << 20)),
            ),
            cost_estimate=cost,
        )(x2d, w1_bf16, b1_2d, w2_bf16, b2_2d)

    resident_fits = _resident_vmem_est(TM, D, H, 1) * 5 // 4 + (16 << 20) <= cap
    use_stream = force_stream or not resident_fits

    if use_stream:
        TH = th if th is not None else _choose_th(H, D, TM, cap)
        try:
            out = run_stream(TH, weight_bufs=1)
        except Exception:                       # fallback if Buffered(1) unsupported
            out = run_stream(TH, weight_bufs=2)
    else:
        try:
            out = run_resident(weight_bufs=1)
        except Exception:                       # fallback if Buffered(1) unsupported
            out = run_resident(weight_bufs=2)

    out = out[:M] if M_pad != M else out
    return out.reshape(B, T, D)


# ----------------------------------------------------------------------------
# Params / reference
# ----------------------------------------------------------------------------
def init_params(key, n_embd):
    """Deterministic init matching nn.Linear default (uniform +/- 1/sqrt(fan_in))."""
    hidden = 4 * n_embd
    k1, k2, k3, k4 = jax.random.split(key, 4)
    bound1 = 1.0 / jnp.sqrt(n_embd)
    bound2 = 1.0 / jnp.sqrt(hidden)
    # Stored as (in, out) so the kernel does x @ W (equivalent to PyTorch x @ W.T).
    w1 = jax.random.uniform(k1, (n_embd, hidden), jnp.float32, -bound1, bound1)
    b1 = jax.random.uniform(k2, (hidden,), jnp.float32, -bound1, bound1)
    w2 = jax.random.uniform(k3, (hidden, n_embd), jnp.float32, -bound2, bound2)
    b2 = jax.random.uniform(k4, (n_embd,), jnp.float32, -bound2, bound2)
    return w1, b1, w2, b2


def _ref_bf16(x, w1, b1, w2, b2):
    """Reference emulating kernel numerics: bf16 matmul operands, f32 accumulate."""
    bf = lambda a: a.astype(jnp.bfloat16).astype(jnp.float32)
    B, T, D = x.shape
    x2d = x.reshape(B * T, D)
    h = jnp.maximum(bf(x2d) @ bf(w1) + b1, 0.0)
    return (bf(h) @ bf(w2) + b2).reshape(B, T, D)


if __name__ == "__main__":
    key = jax.random.PRNGKey(0)
    k1, k2, k3, k4 = jax.random.split(key, 4)

    # --- Case 1: tiny n_embd -> resident-weight path (also exercises tail padding).
    n_embd = 32
    B, T = 2, 9
    x = jax.random.normal(k1, (B, T, n_embd), jnp.float32)
    w1, b1, w2, b2 = init_params(k2, n_embd)
    y = feed_forward(x, w1, b1, w2, b2)
    jax.block_until_ready(y)
    assert jnp.allclose(y, _ref_bf16(x, w1, b1, w2, b2), atol=1e-2, rtol=1e-2), \
        "resident path: mismatch vs bf16-emulated reference"
    ref_f32 = (jnp.maximum(x.reshape(-1, n_embd) @ w1 + b1, 0.0) @ w2 + b2).reshape(B, T, n_embd)
    assert jnp.allclose(y, ref_f32, atol=5e-2, rtol=5e-2), \
        "resident path: mismatch vs f32 reference"

    # --- Case 2: lane-dense D, forced hidden-dim streaming path (grid_h = 4).
    n_embd2 = 128
    B2, T2 = 2, 16
    x2 = jax.random.normal(k3, (B2, T2, n_embd2), jnp.float32)
    p2 = init_params(k4, n_embd2)
    y2 = feed_forward(x2, *p2, force_stream=True, th=128)
    jax.block_until_ready(y2)
    assert jnp.allclose(y2, _ref_bf16(x2, *p2), atol=1e-2, rtol=1e-2), \
        "streaming path: mismatch vs bf16-emulated reference"

    print("KERNEL_OK")
</pallas_src>

<mosaic_0001>
module attributes {stable_mosaic.version = 11 : i64} {
  func.func @_ffn_resident_kernel(%arg0: i32, %arg1: memref<24x32xf32, #tpu.memory_space<vmem>>, %arg2: memref<32x128xbf16, #tpu.memory_space<vmem>>, %arg3: memref<1x128xf32, #tpu.memory_space<vmem>>, %arg4: memref<128x32xbf16, #tpu.memory_space<vmem>>, %arg5: memref<1x32xf32, #tpu.memory_space<vmem>>, %arg6: memref<24x32xf32, #tpu.memory_space<vmem>>) attributes {dimension_semantics = [#tpu.dimension_semantics<parallel>], iteration_bounds = array<i64: 1>, scalar_prefetch = 0 : i64, scratch_operands = 0 : i64, tpu.core_type = #tpu.core_type<tc>, window_params = [{transform_indices = @transform_0, window_bounds = array<i64: 24, 32>}, {pipeline_mode = #tpu.pipeline_mode<synchronous>, transform_indices = @transform_1, window_bounds = array<i64: 32, 128>}, {pipeline_mode = #tpu.pipeline_mode<synchronous>, transform_indices = @transform_2, window_bounds = array<i64: 1, 128>}, {pipeline_mode = #tpu.pipeline_mode<synchronous>, transform_indices = @transform_3, window_bounds = array<i64: 128, 32>}, {pipeline_mode = #tpu.pipeline_mode<synchronous>, transform_indices = @transform_4, window_bounds = array<i64: 1, 32>}, {transform_indices = @transform_5, window_bounds = array<i64: 24, 32>}]} {
    %c0 = arith.constant 0 : index
    %c0_0 = arith.constant 0 : index
    %0 = vector.load %arg1[%c0, %c0_0] : memref<24x32xf32, #tpu.memory_space<vmem>>, vector<24x32xf32>
    %1 = arith.truncf %0 : vector<24x32xf32> to vector<24x32xbf16>
    %c0_1 = arith.constant 0 : index
    %c0_2 = arith.constant 0 : index
    %2 = vector.load %arg2[%c0_1, %c0_2] : memref<32x128xbf16, #tpu.memory_space<vmem>>, vector<32x128xbf16>
    %cst = arith.constant dense<0.000000e+00> : vector<24x128xf32>
    %3 = tpu.matmul %1, %2, %cst {dimension_numbers = #tpu.dot_dimension_numbers<[1], [0], [0], [1], [0, 0, 1, 1], [], []>} : vector<24x32xbf16>, vector<32x128xbf16>, vector<24x128xf32> -> vector<24x128xf32>
    %c0_3 = arith.constant 0 : index
    %c0_4 = arith.constant 0 : index
    %4 = vector.load %arg3[%c0_3, %c0_4] : memref<1x128xf32, #tpu.memory_space<vmem>>, vector<1x128xf32>
    %5 = vector.broadcast %4 : vector<1x128xf32> to vector<24x128xf32>
    %6 = arith.addf %3, %5 : vector<24x128xf32>
    %cst_5 = arith.constant 0.000000e+00 : f32
    %7 = vector.broadcast %cst_5 : f32 to vector<24x128xf32>
    %8 = arith.maximumf %6, %7 : vector<24x128xf32>
    %9 = arith.truncf %8 : vector<24x128xf32> to vector<24x128xbf16>
    %c0_6 = arith.constant 0 : index
    %c0_7 = arith.constant 0 : index
    %10 = vector.load %arg4[%c0_6, %c0_7] : memref<128x32xbf16, #tpu.memory_space<vmem>>, vector<128x32xbf16>
    %cst_8 = arith.constant dense<0.000000e+00> : vector<24x32xf32>
    %11 = tpu.matmul %9, %10, %cst_8 {dimension_numbers = #tpu.dot_dimension_numbers<[1], [0], [0], [1], [0, 0, 1, 1], [], []>} : vector<24x128xbf16>, vector<128x32xbf16>, vector<24x32xf32> -> vector<24x32xf32>
    %c0_9 = arith.constant 0 : index
    %c0_10 = arith.constant 0 : index
    %12 = vector.load %arg5[%c0_9, %c0_10] : memref<1x32xf32, #tpu.memory_space<vmem>>, vector<1x32xf32>
    %13 = vector.broadcast %12 : vector<1x32xf32> to vector<24x32xf32>
    %14 = arith.addf %11, %13 : vector<24x32xf32>
    %c0_11 = arith.constant 0 : index
    %c0_12 = arith.constant 0 : index
    %15 = vector.load %arg6[%c0_11, %c0_12] : memref<24x32xf32, #tpu.memory_space<vmem>>, vector<24x32xf32>
    tpu.vector_store %arg6[%c0_11, %c0_12], %14 {strides = array<i32>} : memref<24x32xf32, #tpu.memory_space<vmem>>, vector<24x32xf32>,
    return
  }
  func.func @transform_0(%arg0: i32) -> (i32, i32) {
    %c0_i32 = arith.constant 0 : i32
    %c0_i32_0 = arith.constant 0 : i32
    return %arg0, %c0_i32 : i32, i32
  }
  func.func @transform_1(%arg0: i32) -> (i32, i32) {
    %c0_i32 = arith.constant 0 : i32
    %c0_i32_0 = arith.constant 0 : i32
    %c0_i32_1 = arith.constant 0 : i32
    return %c0_i32, %c0_i32_0 : i32, i32
  }
  func.func @transform_2(%arg0: i32) -> (i32, i32) {
    %c0_i32 = arith.constant 0 : i32
    %c0_i32_0 = arith.constant 0 : i32
    %c0_i32_1 = arith.constant 0 : i32
    return %c0_i32, %c0_i32_0 : i32, i32
  }
  func.func @transform_3(%arg0: i32) -> (i32, i32) {
    %c0_i32 = arith.constant 0 : i32
    %c0_i32_0 = arith.constant 0 : i32
    %c0_i32_1 = arith.constant 0 : i32
    return %c0_i32, %c0_i32_0 : i32, i32
  }
  func.func @transform_4(%arg0: i32) -> (i32, i32) {
    %c0_i32 = arith.constant 0 : i32
    %c0_i32_0 = arith.constant 0 : i32
    %c0_i32_1 = arith.constant 0 : i32
    return %c0_i32, %c0_i32_0 : i32, i32
  }
  func.func @transform_5(%arg0: i32) -> (i32, i32) {
    %c0_i32 = arith.constant 0 : i32
    %c0_i32_0 = arith.constant 0 : i32
    return %arg0, %c0_i32 : i32, i32
  }
}

module attributes {stable_mosaic.version = 11 : i64} {
  func.func @_ffn_resident_kernel(%arg0: i32, %arg1: memref<24x32xf32, #tpu.memory_space<vmem>>, %arg2: memref<32x128xbf16, #tpu.memory_space<vmem>>, %arg3: memref<1x128xf32, #tpu.memory_space<vmem>>, %arg4: memref<128x32xbf16, #tpu.memory_space<vmem>>, %arg5: memref<1x32xf32, #tpu.memory_space<vmem>>, %arg6: memref<24x32xf32, #tpu.memory_space<vmem>>) attributes {dimension_semantics = [#tpu.dimension_semantics<parallel>], iteration_bounds = array<i64: 1>, scalar_prefetch = 0 : i64, scratch_operands = 0 : i64, tpu.core_type = #tpu.core_type<tc>, window_params = [{transform_indices = @transform_0, window_bounds = array<i64: 24, 32>}, {pipeline_mode = #tpu.pipeline_mode<synchronous>, transform_indices = @transform_1, window_bounds = array<i64: 32, 128>}, {pipeline_mode = #tpu.pipeline_mode<synchronous>, transform_indices = @transform_2, window_bounds = array<i64: 1, 128>}, {pipeline_mode = #tpu.pipeline_mode<synchronous>, transform_indices = @transform_3, window_bounds = array<i64: 128, 32>}, {pipeline_mode = #tpu.pipeline_mode<synchronous>, transform_indices = @transform_4, window_bounds = array<i64: 1, 32>}, {transform_indices = @transform_5, window_bounds = array<i64: 24, 32>}]} {
    %c0 = arith.constant 0 : index
    %c0_0 = arith.constant 0 : index
    %0 = vector.load %arg1[%c0, %c0_0] : memref<24x32xf32, #tpu.memory_space<vmem>>, vector<24x32xf32>
    %1 = arith.truncf %0 : vector<24x32xf32> to vector<24x32xbf16>
    %c0_1 = arith.constant 0 : index
    %c0_2 = arith.constant 0 : index
    %2 = vector.load %arg2[%c0_1, %c0_2] : memref<32x128xbf16, #tpu.memory_space<vmem>>, vector<32x128xbf16>
    %cst = arith.constant dense<0.000000e+00> : vector<24x128xf32>
    %3 = tpu.matmul %1, %2, %cst {dimension_numbers = #tpu.dot_dimension_numbers<[1], [0], [0], [1], [0, 0, 1, 1], [], []>} : vector<24x32xbf16>, vector<32x128xbf16>, vector<24x128xf32> -> vector<24x128xf32>
    %c0_3 = arith.constant 0 : index
    %c0_4 = arith.constant 0 : index
    %4 = vector.load %arg3[%c0_3, %c0_4] : memref<1x128xf32, #tpu.memory_space<vmem>>, vector<1x128xf32>
    %5 = vector.broadcast %4 : vector<1x128xf32> to vector<24x128xf32>
    %6 = arith.addf %3, %5 : vector<24x128xf32>
    %cst_5 = arith.constant 0.000000e+00 : f32
    %7 = vector.broadcast %cst_5 : f32 to vector<24x128xf32>
    %8 = arith.maximumf %6, %7 : vector<24x128xf32>
    %9 = arith.truncf %8 : vector<24x128xf32> to vector<24x128xbf16>
    %c0_6 = arith.constant 0 : index
    %c0_7 = arith.constant 0 : index
    %10 = vector.load %arg4[%c0_6, %c0_7] : memref<128x32xbf16, #tpu.memory_space<vmem>>, vector<128x32xbf16>
    %cst_8 = arith.constant dense<0.000000e+00> : vector<24x32xf32>
    %11 = tpu.matmul %9, %10, %cst_8 {dimension_numbers = #tpu.dot_dimension_numbers<[1], [0], [0], [1], [0, 0, 1, 1], [], []>} : vector<24x128xbf16>, vector<128x32xbf16>, vector<24x32xf32> -> vector<24x32xf32>
    %c0_9 = arith.constant 0 : index
    %c0_10 = arith.constant 0 : index
    %12 = vector.load %arg5[%c0_9, %c0_10] : memref<1x32xf32, #tpu.memory_space<vmem>>, vector<1x32xf32>
    %13 = vector.broadcast %12 : vector<1x32xf32> to vector<24x32xf32>
    %14 = arith.addf %11, %13 : vector<24x32xf32>
    %c0_11 = arith.constant 0 : index
    %c0_12 = arith.constant 0 : index
    %15 = vector.load %arg6[%c0_11, %c0_12] : memref<24x32xf32, #tpu.memory_space<vmem>>, vector<24x32xf32>
    tpu.vector_store %arg6[%c0_11, %c0_12], %14 {strides = array<i32>} : memref<24x32xf32, #tpu.memory_space<vmem>>, vector<24x32xf32>,
    return
  }
  func.func @transform_0(%arg0: i32) -> (i32, i32) {
    %c0_i32 = arith.constant 0 : i32
    %c0_i32_0 = arith.constant 0 : i32
    return %arg0, %c0_i32 : i32, i32
  }
  func.func @transform_1(%arg0: i32) -> (i32, i32) {
    %c0_i32 = arith.constant 0 : i32
    %c0_i32_0 = arith.constant 0 : i32
    %c0_i32_1 = arith.constant 0 : i32
    return %c0_i32, %c0_i32_0 : i32, i32
  }
  func.func @transform_2(%arg0: i32) -> (i32, i32) {
    %c0_i32 = arith.constant 0 : i32
    %c0_i32_0 = arith.constant 0 : i32
    %c0_i32_1 = arith.constant 0 : i32
    return %c0_i32, %c0_i32_0 : i32, i32
  }
  func.func @transform_3(%arg0: i32) -> (i32, i32) {
    %c0_i32 = arith.constant 0 : i32
    %c0_i32_0 = arith.constant 0 : i32
    %c0_i32_1 = arith.constant 0 : i32
    return %c0_i32, %c0_i32_0 : i32, i32
  }
  func.func @transform_4(%arg0: i32) -> (i32, i32) {
    %c0_i32 = arith.constant 0 : i32
    %c0_i32_0 = arith.constant 0 : i32
    %c0_i32_1 = arith.constant 0 : i32
    return %c0_i32, %c0_i32_0 : i32, i32
  }
  func.func @transform_5(%arg0: i32) -> (i32, i32) {
    %c0_i32 = arith.constant 0 : i32
    %c0_i32_0 = arith.constant 0 : i32
    return %arg0, %c0_i32 : i32, i32
  }
}

</mosaic_0001>

<bundles_post_ra>
// kernel: tpu_custom_call.1
= control target key start
LH: loop header
LB: loop body
LE: loop exit
PB: predicated region body
PF: predicated region fallthrough
CT: control target
= control target key end

     0   :  { %vm50_vm0 = vcmask 261120   ;;  %s425_s0 = inlined_call_operand.vmem [shape: f32[24,32], index: 0, kind: input, shape index: {}]   ;;  %s426_s1 = inlined_call_operand.vmem [shape: bf16[32,128], index: 1, kind: input, shape index: {}]   ;;  %s427_s2 = inlined_call_operand.vmem [shape: f32[1,128], index: 2, kind: input, shape index: {}]   ;;  %s428_s3 = inlined_call_operand.vmem [shape: bf16[128,32], index: 3, kind: input, shape index: {}]   ;;  %s429_s4 = inlined_call_operand.vmem [shape: f32[1,32], index: 4, kind: input, shape index: {}]   ;;  %s430_s5 = inlined_call_operand.hbm [shape: f32[24,32], index: 5, kind: output, shape index: {}]  }
   0x1   :  { %v307_v0 = vld [vmem:[%s426_s1 + $0x8] sm:$0xff]   ;;  %v308_v1 = vld [vmem:[%s426_s1] sm:$0xff]   ;;  %v24_v4 = vld [vmem:[%s425_s0 + $0x10] sm:$0xff] }
   0x2   :  { %276 = vmatprep.subr.bf16.mxu0 %v307_v0  ;;  %v22_v2 = vld [vmem:[%s425_s0] sm:$0xff]  ;;  %v23_v3 = vld [vmem:[%s425_s0 + $0x8] sm:$0xff]  ;;  %v309_v6 = vld [vmem:[%s428_s3 + $0x38] sm:$0xff]   ;;  %v26_v8 = vpack.c.bf16 %v24_v4, %v24_v4 }
   0x3   :  { %277 = vmatpush3.bf16.msra.mxu0 %v307_v0  ;;  %v25_v5 = vpack.c.bf16 %v23_v3, %v22_v2  ;;  %v310_v7 = vld [vmem:[%s428_s3 + $0x30] sm:$0xff]   ;;  %284 = vmatprep.subr.bf16.mxu1 %v309_v6  ;;  %v311_v9 = vld [vmem:[%s428_s3 + $0x28] sm:$0xff]  }
   0x4   :  { %278 = vmatprep.subr.bf16.mxu0 %v308_v1  ;;  %285 = vmatpush3.bf16.msra.mxu1 %v309_v6 }
   0x5   :  { %280 = vmatprep.mubr.msk.bf16.mxu0 %vm50_vm0, %v25_v5  ;;  %286 = vmatprep.subr.bf16.mxu1 %v310_v7 }
   0x7   :  { %279 = vmatpush3.bf16.msra.mxu0 %v308_v1 }
   0x8   :  { %287 = vmatpush3.bf16.msra.mxu1 %v310_v7 }
   0xa   :  { %281 = vmatmul.mubr.msk.bf16.vlgmr.msra.gmra.mxu0 %vm50_vm0, %v26_v8 }
   0xb   :  { %10 = vsyncpa [#allocation3], 0  ;;  %288 = vmatprep.subr.bf16.mxu1 %v311_v9  ;;  %v312_v10 = vld [vmem:[%s428_s3 + $0x20] sm:$0xff]   ;;  %v313_v11 = vld [vmem:[%s428_s3 + $0x18] sm:$0xff]  }
   0xc   :  { %289 = vmatpush3.bf16.msra.mxu1 %v311_v9  ;;  %v314_v12 = vld [vmem:[%s428_s3 + $0x10] sm:$0xff]   ;;  %v315_v13 = vld [vmem:[%s428_s3 + $0x8] sm:$0xff]   ;;  %v316_v14 = vld [vmem:[%s428_s3] sm:$0xff]  }
   0xd   :  { %290 = vmatprep.subr.bf16.mxu1 %v312_v10  ;;  %v248_v16 = vld [vmem:[%s427_s2] ss:$0 sm:$0xff]  ;;  %s339_s2 = smov [#allocation2]  }
   0xe   :  { %v253_v28 = vld [vmem:[%s429_s4] ss:$0 sm:$0xff]  ;;  %s237_s20 = sshll.u32 %s339_s2, 4  ;;  %s238_s20 = int_to_ptr.vmem [resolvable:$true] %s237_s20 }
   0xf   :  { %s317_s21 = scalar_lea.vmem %s238_s20, 384  ;;  %p322_p1 = scmp.lt.s32.totalorder %s238_s20, %s238_s20 }
  0x10   :  { %291 = vmatpush3.bf16.msra.mxu1 %v312_v10  ;;  %p318_p0 = scmp.ne.s32.totalorder %s238_s20, %s317_s21  ;;  %p323_p2 = scmp.lt.s32.totalorder %s317_s21, %s317_s21 }
  0x11   :  { %292 = vmatprep.subr.bf16.mxu1 %v313_v11 }
  0x12   :  { %p324_p3 = por %p323_p2, %p322_p1 }
  0x14   :  { %293 = vmatpush3.bf16.msra.mxu1 %v313_v11  ;;  %p325_p4 = pnand %p324_p3, %p318_p0 }
  0x15   :  { %294 = vmatprep.subr.bf16.mxu1 %v314_v12 }
  0x18   :  { %295 = vmatpush3.bf16.msra.mxu1 %v314_v12 }
  0x19   :  { %296 = vmatprep.subr.bf16.mxu1 %v315_v13 }
  0x1c   :  { %297 = vmatpush3.bf16.msra.mxu1 %v315_v13 }
  0x1d   :  { %298 = vmatprep.subr.bf16.mxu1 %v316_v14 }
  0x20   :  { %299 = vmatpush3.bf16.msra.mxu1 %v316_v14 }
  0xca   :  { %v282_v15 = vpop.f32.mrf.mxu0 }
  0xcb   :  { %v100_v18 = vadd.f32 %v282_v15, %v248_v16 }
  0xcc   :  { %v91_v17 = vpop.f32.mrf.mxu0 }
  0xcd   :  { %v92_v20 = vadd.f32 %v248_v16, %v91_v17  ;;  %v107_v23 = vmax.f32 %v100_v18, 0.0 }
  0xce   :  { %v283_v19 = vpop.f32.mrf.mxu0 }
  0xcf   :  { %v105_v24 = vmax.f32 %v92_v20, 0.0  ;;  %v109_v27 = vpack.c.bf16 %v107_v23, %v107_v23 }
  0xd0   :  { %v94_v21 = vpop.f32.mrf.mxu0 }
  0xd1   :  { %v95_v22 = vadd.f32 %v248_v16, %v94_v21 }
  0xd3   :  { %v106_v25 = vmax.f32 %v95_v22, 0.0 }
  0xd5   :  { %v108_v26 = vpack.c.bf16 %v106_v25, %v105_v24 }
  0xd7   :  { %300 = vmatprep.mubr.bf16.mxu1 %v108_v26 }
  0xd8   :  { %301 = vmatmul.mubr.bf16.vlgmr.msra.gmra.mxu1 %v109_v27 }
 0x198   :  { %v302_v29 = vpop.f32.mrf.mxu1 }
 0x199   :  { %v224_v30 = vadd.f32 %v302_v29, %v253_v28 }
 0x19a   :  { %v215_v31 = vpop.f32.mrf.mxu1 }
 0x19b   :  { %231 = vst.msk [vmem:[#allocation2 + $0x10] sm:$0xff] %vm50_vm0, %v224_v30  ;;  %v216_v32 = vadd.f32 %v253_v28, %v215_v31 }
 0x19c   :  { %v303_v33 = vpop.f32.mrf.mxu1 }
 0x19d   :  { %229 = vst.msk [vmem:[#allocation2] sm:$0xff] %vm50_vm0, %v216_v32 }
 0x19e   :  { %v218_v34 = vpop.f32.mrf.mxu1 }
 0x19f   :  { %v219_v35 = vadd.f32 %v253_v28, %v218_v34 }
 0x1a1   :  { %230 = vst.msk [vmem:[#allocation2 + $0x8] sm:$0xff] %vm50_vm0, %v219_v35 }
 0x1a2   :  { %328 = shalt.err (!%p325_p4)
}
 0x1a3   :  { %s340_s4 = smov 128   ;;  %s341_s22 = smov 8  }
 0x1a4   :  { %243 = dma.vmem_to_hbm [thread:$0]  %s238_s20, 384, %s430_s5, [#allocation3], %s340_s4, %s340_s4, %s341_s22  }
 0x1a5   :  { %337 = dma.done.wait [#allocation3], 384  }
 0x1a6   :  { %338 = vsyncadd [#allocation3], 4294966912 }
 0x1a7   :  { %247 = vsyncpa [#allocation3], 1 }

// kernel: tpu_custom_call.1
= control target key start
LH: loop header
LB: loop body
LE: loop exit
PB: predicated region body
PF: predicated region fallthrough
CT: control target
= control target key end

     0   :  { %vm50_vm0 = vcmask 261120   ;;  %s425_s0 = inlined_call_operand.vmem [shape: f32[24,32], index: 0, kind: input, shape index: {}]   ;;  %s426_s1 = inlined_call_operand.vmem [shape: bf16[32,128], index: 1, kind: input, shape index: {}]   ;;  %s427_s2 = inlined_call_operand.vmem [shape: f32[1,128], index: 2, kind: input, shape index: {}]   ;;  %s428_s3 = inlined_call_operand.vmem [shape: bf16[128,32], index: 3, kind: input, shape index: {}]   ;;  %s429_s4 = inlined_call_operand.vmem [shape: f32[1,32], index: 4, kind: input, shape index: {}]   ;;  %s430_s5 = inlined_call_operand.hbm [shape: f32[24,32], index: 5, kind: output, shape index: {}]  }
   0x1   :  { %v307_v0 = vld [vmem:[%s426_s1 + $0x8] sm:$0xff]   ;;  %v308_v1 = vld [vmem:[%s426_s1] sm:$0xff]   ;;  %v24_v4 = vld [vmem:[%s425_s0 + $0x10] sm:$0xff] }
   0x2   :  { %276 = vmatprep.subr.bf16.mxu0 %v307_v0  ;;  %v22_v2 = vld [vmem:[%s425_s0] sm:$0xff]  ;;  %v23_v3 = vld [vmem:[%s425_s0 + $0x8] sm:$0xff]  ;;  %v309_v6 = vld [vmem:[%s428_s3 + $0x38] sm:$0xff]   ;;  %v26_v8 = vpack.c.bf16 %v24_v4, %v24_v4 }
   0x3   :  { %277 = vmatpush3.bf16.msra.mxu0 %v307_v0  ;;  %v25_v5 = vpack.c.bf16 %v23_v3, %v22_v2  ;;  %v310_v7 = vld [vmem:[%s428_s3 + $0x30] sm:$0xff]   ;;  %284 = vmatprep.subr.bf16.mxu1 %v309_v6  ;;  %v311_v9 = vld [vmem:[%s428_s3 + $0x28] sm:$0xff]  }
   0x4   :  { %278 = vmatprep.subr.bf16.mxu0 %v308_v1  ;;  %285 = vmatpush3.bf16.msra.mxu1 %v309_v6 }
   0x5   :  { %280 = vmatprep.mubr.msk.bf16.mxu0 %vm50_vm0, %v25_v5  ;;  %286 = vmatprep.subr.bf16.mxu1 %v310_v7 }
   0x7   :  { %279 = vmatpush3.bf16.msra.mxu0 %v308_v1 }
   0x8   :  { %287 = vmatpush3.bf16.msra.mxu1 %v310_v7 }
   0xa   :  { %281 = vmatmul.mubr.msk.bf16.vlgmr.msra.gmra.mxu0 %vm50_vm0, %v26_v8 }
   0xb   :  { %10 = vsyncpa [#allocation3], 0  ;;  %288 = vmatprep.subr.bf16.mxu1 %v311_v9  ;;  %v312_v10 = vld [vmem:[%s428_s3 + $0x20] sm:$0xff]   ;;  %v313_v11 = vld [vmem:[%s428_s3 + $0x18] sm:$0xff]  }
   0xc   :  { %289 = vmatpush3.bf16.msra.mxu1 %v311_v9  ;;  %v314_v12 = vld [vmem:[%s428_s3 + $0x10] sm:$0xff]   ;;  %v315_v13 = vld [vmem:[%s428_s3 + $0x8] sm:$0xff]   ;;  %v316_v14 = vld [vmem:[%s428_s3] sm:$0xff]  }
   0xd   :  { %290 = vmatprep.subr.bf16.mxu1 %v312_v10  ;;  %v248_v16 = vld [vmem:[%s427_s2] ss:$0 sm:$0xff]  ;;  %s339_s2 = smov [#allocation2]  }
   0xe   :  { %v253_v28 = vld [vmem:[%s429_s4] ss:$0 sm:$0xff]  ;;  %s237_s20 = sshll.u32 %s339_s2, 4  ;;  %s238_s20 = int_to_ptr.vmem [resolvable:$true] %s237_s20 }
   0xf   :  { %s317_s21 = scalar_lea.vmem %s238_s20, 384  ;;  %p322_p1 = scmp.lt.s32.totalorder %s238_s20, %s238_s20 }
  0x10   :  { %291 = vmatpush3.bf16.msra.mxu1 %v312_v10  ;;  %p318_p0 = scmp.ne.s32.totalorder %s238_s20, %s317_s21  ;;  %p323_p2 = scmp.lt.s32.totalorder %s317_s21, %s317_s21 }
  0x11   :  { %292 = vmatprep.subr.bf16.mxu1 %v313_v11 }
  0x12   :  { %p324_p3 = por %p323_p2, %p322_p1 }
  0x14   :  { %293 = vmatpush3.bf16.msra.mxu1 %v313_v11  ;;  %p325_p4 = pnand %p324_p3, %p318_p0 }
  0x15   :  { %294 = vmatprep.subr.bf16.mxu1 %v314_v12 }
  0x18   :  { %295 = vmatpush3.bf16.msra.mxu1 %v314_v12 }
  0x19   :  { %296 = vmatprep.subr.bf16.mxu1 %v315_v13 }
  0x1c   :  { %297 = vmatpush3.bf16.msra.mxu1 %v315_v13 }
  0x1d   :  { %298 = vmatprep.subr.bf16.mxu1 %v316_v14 }
  0x20   :  { %299 = vmatpush3.bf16.msra.mxu1 %v316_v14 }
  0xca   :  { %v282_v15 = vpop.f32.mrf.mxu0 }
  0xcb   :  { %v100_v18 = vadd.f32 %v282_v15, %v248_v16 }
  0xcc   :  { %v91_v17 = vpop.f32.mrf.mxu0 }
  0xcd   :  { %v92_v20 = vadd.f32 %v248_v16, %v91_v17  ;;  %v107_v23 = vmax.f32 %v100_v18, 0.0 }
  0xce   :  { %v283_v19 = vpop.f32.mrf.mxu0 }
  0xcf   :  { %v105_v24 = vmax.f32 %v92_v20, 0.0  ;;  %v109_v27 = vpack.c.bf16 %v107_v23, %v107_v23 }
  0xd0   :  { %v94_v21 = vpop.f32.mrf.mxu0 }
  0xd1   :  { %v95_v22 = vadd.f32 %v248_v16, %v94_v21 }
  0xd3   :  { %v106_v25 = vmax.f32 %v95_v22, 0.0 }
  0xd5   :  { %v108_v26 = vpack.c.bf16 %v106_v25, %v105_v24 }
  0xd7   :  { %300 = vmatprep.mubr.bf16.mxu1 %v108_v26 }
  0xd8   :  { %301 = vmatmul.mubr.bf16.vlgmr.msra.gmra.mxu1 %v109_v27 }
 0x198   :  { %v302_v29 = vpop.f32.mrf.mxu1 }
 0x199   :  { %v224_v30 = vadd.f32 %v302_v29, %v253_v28 }
 0x19a   :  { %v215_v31 = vpop.f32.mrf.mxu1 }
 0x19b   :  { %231 = vst.msk [vmem:[#allocation2 + $0x10] sm:$0xff] %vm50_vm0, %v224_v30  ;;  %v216_v32 = vadd.f32 %v253_v28, %v215_v31 }
 0x19c   :  { %v303_v33 = vpop.f32.mrf.mxu1 }
 0x19d   :  { %229 = vst.msk [vmem:[#allocation2] sm:$0xff] %vm50_vm0, %v216_v32 }
 0x19e   :  { %v218_v34 = vpop.f32.mrf.mxu1 }
 0x19f   :  { %v219_v35 = vadd.f32 %v253_v28, %v218_v34 }
 0x1a1   :  { %230 = vst.msk [vmem:[#allocation2 + $0x8] sm:$0xff] %vm50_vm0, %v219_v35 }
 0x1a2   :  { %328 = shalt.err (!%p325_p4)
}
 0x1a3   :  { %s340_s4 = smov 128   ;;  %s341_s22 = smov 8  }
 0x1a4   :  { %243 = dma.vmem_to_hbm [thread:$0]  %s238_s20, 384, %s430_s5, [#allocation3], %s340_s4, %s340_s4, %s341_s22  }
 0x1a5   :  { %337 = dma.done.wait [#allocation3], 384  }
 0x1a6   :  { %338 = vsyncadd [#allocation3], 4294966912 }
 0x1a7   :  { %247 = vsyncpa [#allocation3], 1 }

</bundles_post_ra>
